<compile_context>
chip_gen: v7x
topology: tpu7x:2x2x1
jax: 0.10.0
libtpu: 0.0.40
codegen_flags: <defaults>
</compile_context>

<pallas_src>
import math

import jax
import jax.numpy as jnp
from jax.experimental import pallas as pl
from jax.experimental.pallas import tpu as pltpu


# ---------------------------------------------------------------------------
# kernel
# ---------------------------------------------------------------------------
def _gelu_exact(x):
    # nn.GELU() default = exact erf-based GELU (computed in fp32).
    return 0.5 * x * (1.0 + jax.lax.erf(x * (1.0 / math.sqrt(2.0))))


def ffn_kernel(x_ref, w1_ref, b1_ref, w2_ref, b2_ref, out_ref):
    """One (row-tile, ff-tile) step of GELU(x@W1 + b1) @ W2 + b2.

    x_ref  : (bm, D)  input dtype (fp32/bf16) -> cast to bf16 in-kernel
    w1_ref : (D,  bf) bf16      b1_ref : (1, bf) fp32
    w2_ref : (bf, D)  bf16      b2_ref : (1, D)  fp32
    out_ref: (bm, D)  fp32  -- block index constant across the ff axis, so it
                               is VMEM-resident and doubles as the fp32
                               accumulator (no scratch needed).
    """
    f = pl.program_id(1)

    @pl.when(f == 0)
    def _():
        # Initialize the resident output block with the fc2 bias (added once).
        out_ref[...] = jnp.broadcast_to(b2_ref[...], out_ref.shape)

    # fc1 slice on the MXU: bf16 x bf16 -> fp32 accumulation.  The x cast is
    # cheap VPU work hidden under the matmul.
    x_bf = x_ref[...].astype(jnp.bfloat16)
    h = jnp.dot(x_bf, w1_ref[...], preferred_element_type=jnp.float32)
    h = _gelu_exact(h + b1_ref[...])

    # fc2 partial contraction over this ff-tile, accumulated in fp32 directly
    # into the resident output block.
    out_ref[...] += jnp.dot(h.astype(jnp.bfloat16), w2_ref[...],
                            preferred_element_type=jnp.float32)


# ---------------------------------------------------------------------------
# parameter prep (one-time; do NOT call per forward pass)
# ---------------------------------------------------------------------------
def prepare_ffn_params(w1, b1, w2, b2):
    """One-time conversion: weights -> bf16 (MXU-native, half the HBM bytes),
    biases -> fp32 rows.  PyTorch mapping: w1 = fc1.weight.T, w2 = fc2.weight.T."""
    D, F = w1.shape
    return (w1.astype(jnp.bfloat16),
            b1.reshape(1, F).astype(jnp.float32),
            w2.astype(jnp.bfloat16),
            b2.reshape(1, D).astype(jnp.float32))


# ---------------------------------------------------------------------------
# tile sizing / VMEM budgeting
# ---------------------------------------------------------------------------
def _vmem_limit_bytes():
    try:
        cap = pltpu.get_tpu_info().vmem_capacity_bytes
    except Exception:
        cap = 64 << 20  # conservative fallback (v7x per-TensorCore size)
    # Leave headroom for compiler scratch; cap at 128 MiB (v5e/v6e physical).
    return min(int(cap * 7 // 8), 128 << 20)


def _choose_tiles(M, D, F, x_itemsize, budget):
    """Pick (block_m, block_f) against the VMEM budget.

    Preferences: bf = F (fully resident weights) when it fits; bm as large as
    possible but with >= 2 row tiles so the 'parallel' axis can split across
    v7x's two TensorCores.
    """
    def est_bytes(bm, bf):
        return (2 * bm * D * x_itemsize   # x tile (double-buffered)
                + 2 * D * bf * 2          # W1 tile bf16
                + 2 * bf * D * 2          # W2 tile bf16
                + 2 * bm * D * 4          # fp32 output / accumulator
                + 2 * (bf + D) * 4        # biases
                + bm * bf * 4             # fp32 intermediate h
                + bm * (D + bf) * 2)      # bf16 cast temporaries

    bm_prefs = [512, 256, 128, 64, 32, 16, 8]
    bf_prefs = [F, 2048, 1024, 512, 256, 128]

    bm_cands = [b for b in bm_prefs if b <= M and M % b == 0] or [M]
    multi_tile = [b for b in bm_cands if M // b >= 2]
    bm_order = multi_tile + [b for b in bm_cands if b not in multi_tile]

    bf_cands, seen = [], set()
    for b in bf_prefs:
        if b <= F and F % b == 0 and b not in seen:
            bf_cands.append(b)
            seen.add(b)
    if not bf_cands:
        bf_cands = [F]

    for bm in bm_order:
        for bf in bf_cands:
            if est_bytes(bm, bf) <= budget:
                return bm, bf
    return bm_order[-1], bf_cands[-1]


# ---------------------------------------------------------------------------
# wrapper
# ---------------------------------------------------------------------------
def feed_forward(x, w1, b1, w2, b2, *, block_m=None, block_f=None):
    """y = GELU(x @ w1 + b1) @ w2 + b2   (dropout = identity, eval mode).

    x : (..., D), any float dtype (cast to bf16 per-tile inside the kernel).
    w1: (D, F) bf16, w2: (F, D) bf16 -- prepare once with prepare_ffn_params().
    Returns fp32 with x's leading shape (fp32 accumulation in the output).
    """
    if w1.dtype != jnp.bfloat16 or w2.dtype != jnp.bfloat16:
        raise ValueError("feed_forward expects bf16 weights; convert once with "
                         "prepare_ffn_params() instead of casting every call.")

    orig_shape = x.shape
    D = orig_shape[-1]
    F = w1.shape[1]
    x2 = x.reshape(-1, D)
    M = x2.shape[0]

    b1 = b1.reshape(1, F).astype(jnp.float32)
    b2 = b2.reshape(1, D).astype(jnp.float32)

    vmem_limit = _vmem_limit_bytes()
    auto_bm, auto_bf = _choose_tiles(M, D, F, x2.dtype.itemsize,
                                     budget=int(vmem_limit * 0.9))
    bm = block_m or auto_bm
    bf = block_f or auto_bf
    assert M % bm == 0, f"rows {M} must be divisible by block_m {bm}"
    assert F % bf == 0, f"ff_dim {F} must be divisible by block_f {bf}"

    grid = (M // bm, F // bf)

    out = pl.pallas_call(
        ffn_kernel,
        out_shape=jax.ShapeDtypeStruct((M, D), jnp.float32),
        grid=grid,
        in_specs=[
            pl.BlockSpec((bm, D), lambda i, f: (i, 0)),   # x row-tile
            pl.BlockSpec((D, bf), lambda i, f: (0, f)),   # W1 column-tile
            pl.BlockSpec((1, bf), lambda i, f: (0, f)),   # b1 tile
            pl.BlockSpec((bf, D), lambda i, f: (f, 0)),   # W2 row-tile
            pl.BlockSpec((1, D), lambda i, f: (0, 0)),    # b2 (resident)
        ],
        # Constant block index across f -> VMEM-resident fp32 accumulator.
        out_specs=pl.BlockSpec((bm, D), lambda i, f: (i, 0)),
        compiler_params=pltpu.CompilerParams(
            dimension_semantics=("parallel", "arbitrary"),
            vmem_limit_bytes=vmem_limit),
    )(x2, w1, b1, w2, b2)

    return out.reshape(orig_shape[:-1] + (D,))


# ---------------------------------------------------------------------------
# fp32 reference (pure JAX) for a sanity check
# ---------------------------------------------------------------------------
def ffn_reference(x, w1, b1, w2, b2):
    h = x @ w1 + b1
    h = _gelu_exact(h)
    return h @ w2 + b2


# ---------------------------------------------------------------------------
if __name__ == "__main__":
    # Small smoke-test shapes (lane-dense: last dims multiples of 128).
    # Not a perf benchmark -- tile-size conclusions don't transfer from here.
    batch, seq_len = 2, 8
    d_model, ff_dim = 128, 512

    key = jax.random.PRNGKey(0)
    kx, k1, kb1, k2, kb2 = jax.random.split(key, 5)

    x = jax.random.normal(kx, (batch, seq_len, d_model), jnp.float32)
    # PyTorch mapping: w1 = fc1.weight.T (D, F), w2 = fc2.weight.T (F, D).
    w1 = 0.02 * jax.random.normal(k1, (d_model, ff_dim), jnp.float32)
    b1 = 0.02 * jax.random.normal(kb1, (ff_dim,), jnp.float32)
    w2 = 0.02 * jax.random.normal(k2, (ff_dim, d_model), jnp.float32)
    b2 = 0.02 * jax.random.normal(kb2, (d_model,), jnp.float32)

    params = prepare_ffn_params(w1, b1, w2, b2)   # one-time bf16 conversion

    y = feed_forward(x, *params)
    y = jax.block_until_ready(y)

    assert y.shape == (batch, seq_len, d_model)
    assert bool(jnp.all(jnp.isfinite(y)))

    # bf16 matmuls vs fp32 reference: loose tolerance.
    ref = ffn_reference(x, w1, b1.reshape(1, -1), w2, b2.reshape(1, -1))
    max_err = float(jnp.max(jnp.abs(y - ref)))
    assert max_err < 2e-2, f"max abs err {max_err}"

    print("KERNEL_OK")
</pallas_src>

<mosaic_0001>
module attributes {stable_mosaic.version = 11 : i64} {
  func.func @ffn_kernel(%arg0: i32, %arg1: i32, %arg2: memref<8x128xf32, #tpu.memory_space<vmem>>, %arg3: memref<128x512xbf16, #tpu.memory_space<vmem>>, %arg4: memref<1x512xf32, #tpu.memory_space<vmem>>, %arg5: memref<512x128xbf16, #tpu.memory_space<vmem>>, %arg6: memref<1x128xf32, #tpu.memory_space<vmem>>, %arg7: memref<8x128xf32, #tpu.memory_space<vmem>>) attributes {dimension_semantics = [#tpu.dimension_semantics<parallel>, #tpu.dimension_semantics<arbitrary>], iteration_bounds = array<i64: 2, 1>, scalar_prefetch = 0 : i64, scratch_operands = 0 : i64, tpu.core_type = #tpu.core_type<tc>, window_params = [{transform_indices = @transform_0, window_bounds = array<i64: 8, 128>}, {transform_indices = @transform_1, window_bounds = array<i64: 128, 512>}, {transform_indices = @transform_2, window_bounds = array<i64: 1, 512>}, {transform_indices = @transform_3, window_bounds = array<i64: 512, 128>}, {pipeline_mode = #tpu.pipeline_mode<synchronous>, transform_indices = @transform_4, window_bounds = array<i64: 1, 128>}, {transform_indices = @transform_5, window_bounds = array<i64: 8, 128>}]} {
    %c0_i32 = arith.constant 0 : i32
    %0 = arith.cmpi eq, %arg1, %c0_i32 : i32
    %1 = arith.extui %0 : i1 to i32
    %c0_i32_0 = arith.constant 0 : i32
    %2 = arith.cmpi ne, %1, %c0_i32_0 : i32
    scf.if %2 {
      %c0_16 = arith.constant 0 : index
      %c0_17 = arith.constant 0 : index
      %24 = vector.load %arg6[%c0_16, %c0_17] : memref<1x128xf32, #tpu.memory_space<vmem>>, vector<1x128xf32>
      %25 = vector.shape_cast %24 : vector<1x128xf32> to vector<1x128xf32>
      %26 = vector.broadcast %25 : vector<1x128xf32> to vector<8x128xf32>
      %c0_18 = arith.constant 0 : index
      %c0_19 = arith.constant 0 : index
      %27 = vector.load %arg7[%c0_18, %c0_19] : memref<8x128xf32, #tpu.memory_space<vmem>>, vector<8x128xf32>
      tpu.vector_store %arg7[%c0_18, %c0_19], %26 {strides = array<i32>} : memref<8x128xf32, #tpu.memory_space<vmem>>, vector<8x128xf32>,
    } else {
    }
    %c0 = arith.constant 0 : index
    %c0_1 = arith.constant 0 : index
    %3 = vector.load %arg2[%c0, %c0_1] : memref<8x128xf32, #tpu.memory_space<vmem>>, vector<8x128xf32>
    %4 = arith.truncf %3 : vector<8x128xf32> to vector<8x128xbf16>
    %c0_2 = arith.constant 0 : index
    %c0_3 = arith.constant 0 : index
    %5 = vector.load %arg3[%c0_2, %c0_3] : memref<128x512xbf16, #tpu.memory_space<vmem>>, vector<128x512xbf16>
    %cst = arith.constant dense<0.000000e+00> : vector<8x512xf32>
    %6 = tpu.matmul %4, %5, %cst {dimension_numbers = #tpu.dot_dimension_numbers<[1], [0], [0], [1], [0, 0, 1, 1], [], []>} : vector<8x128xbf16>, vector<128x512xbf16>, vector<8x512xf32> -> vector<8x512xf32>
    %c0_4 = arith.constant 0 : index
    %c0_5 = arith.constant 0 : index
    %7 = vector.load %arg4[%c0_4, %c0_5] : memref<1x512xf32, #tpu.memory_space<vmem>>, vector<1x512xf32>
    %8 = vector.broadcast %7 : vector<1x512xf32> to vector<8x512xf32>
    %9 = arith.addf %6, %8 : vector<8x512xf32>
    %cst_6 = arith.constant 5.000000e-01 : f32
    %10 = vector.broadcast %cst_6 : f32 to vector<8x512xf32>
    %11 = arith.mulf %10, %9 : vector<8x512xf32>
    %cst_7 = arith.constant 0.707106769 : f32
    %12 = vector.broadcast %cst_7 : f32 to vector<8x512xf32>
    %13 = arith.mulf %9, %12 : vector<8x512xf32>
    %14 = math.erf %13 : vector<8x512xf32>
    %cst_8 = arith.constant 1.000000e+00 : f32
    %15 = vector.broadcast %cst_8 : f32 to vector<8x512xf32>
    %16 = arith.addf %15, %14 : vector<8x512xf32>
    %17 = arith.mulf %11, %16 : vector<8x512xf32>
    %c0_9 = arith.constant 0 : index
    %c0_10 = arith.constant 0 : index
    %18 = vector.load %arg7[%c0_9, %c0_10] : memref<8x128xf32, #tpu.memory_space<vmem>>, vector<8x128xf32>
    %19 = arith.truncf %17 : vector<8x512xf32> to vector<8x512xbf16>
    %c0_11 = arith.constant 0 : index
    %c0_12 = arith.constant 0 : index
    %20 = vector.load %arg5[%c0_11, %c0_12] : memref<512x128xbf16, #tpu.memory_space<vmem>>, vector<512x128xbf16>
    %cst_13 = arith.constant dense<0.000000e+00> : vector<8x128xf32>
    %21 = tpu.matmul %19, %20, %cst_13 {dimension_numbers = #tpu.dot_dimension_numbers<[1], [0], [0], [1], [0, 0, 1, 1], [], []>} : vector<8x512xbf16>, vector<512x128xbf16>, vector<8x128xf32> -> vector<8x128xf32>
    %22 = arith.addf %18, %21 : vector<8x128xf32>
    %c0_14 = arith.constant 0 : index
    %c0_15 = arith.constant 0 : index
    %23 = vector.load %arg7[%c0_14, %c0_15] : memref<8x128xf32, #tpu.memory_space<vmem>>, vector<8x128xf32>
    tpu.vector_store %arg7[%c0_14, %c0_15], %22 {strides = array<i32>} : memref<8x128xf32, #tpu.memory_space<vmem>>, vector<8x128xf32>,
    return
  }
  func.func @transform_0(%arg0: i32, %arg1: i32) -> (i32, i32) {
    %c0_i32 = arith.constant 0 : i32
    %c0_i32_0 = arith.constant 0 : i32
    return %arg0, %c0_i32 : i32, i32
  }
  func.func @transform_1(%arg0: i32, %arg1: i32) -> (i32, i32) {
    %c0_i32 = arith.constant 0 : i32
    %c0_i32_0 = arith.constant 0 : i32
    return %c0_i32, %arg1 : i32, i32
  }
  func.func @transform_2(%arg0: i32, %arg1: i32) -> (i32, i32) {
    %c0_i32 = arith.constant 0 : i32
    %c0_i32_0 = arith.constant 0 : i32
    return %c0_i32, %arg1 : i32, i32
  }
  func.func @transform_3(%arg0: i32, %arg1: i32) -> (i32, i32) {
    %c0_i32 = arith.constant 0 : i32
    %c0_i32_0 = arith.constant 0 : i32
    return %arg1, %c0_i32 : i32, i32
  }
  func.func @transform_4(%arg0: i32, %arg1: i32) -> (i32, i32) {
    %c0_i32 = arith.constant 0 : i32
    %c0_i32_0 = arith.constant 0 : i32
    %c0_i32_1 = arith.constant 0 : i32
    return %c0_i32, %c0_i32_0 : i32, i32
  }
  func.func @transform_5(%arg0: i32, %arg1: i32) -> (i32, i32) {
    %c0_i32 = arith.constant 0 : i32
    %c0_i32_0 = arith.constant 0 : i32
    return %arg0, %c0_i32 : i32, i32
  }
}

</mosaic_0001>

<bundles_post_ra>
// kernel: tpu_custom_call.1
= control target key start
LH: loop header
LB: loop body
LE: loop exit
PB: predicated region body
PF: predicated region fallthrough
CT: control target
= control target key end

     0   :  { %10 = vsyncpa [#allocation3], 0  ;;  %s1898_s0 = inlined_call_operand.hbm [shape: f32[16,128], index: 0, kind: input, shape index: {}]   ;;  %s1899_s1 = inlined_call_operand.hbm [shape: bf16[128,512], index: 1, kind: input, shape index: {}]   ;;  %s1900_s2 = inlined_call_operand.vmem [shape: f32[1,512], index: 2, kind: input, shape index: {}]   ;;  %s1901_s3 = inlined_call_operand.hbm [shape: bf16[512,128], index: 3, kind: input, shape index: {}]   ;;  %s1902_s4 = inlined_call_operand.vmem [shape: f32[1,128], index: 4, kind: input, shape index: {}]   ;;  %s1903_s5 = inlined_call_operand.hbm [shape: f32[16,128], index: 5, kind: output, shape index: {}]  }
   0x1   :  { %12 = vsyncpa [#allocation3 + $0x1], 0 }
   0x2   :  { %13 = vsyncpa [#allocation6], 0 }
   0x3   :  { %14 = vsyncpa [#allocation4], 0 }
   0x4   :  { %16 = vsyncpa [#allocation4 + $0x1], 0  ;;  %s1635_s18 = smov 0   ;;  %s1637_s19 = smov 0  }
   0x5   :  { %s1639_s20 = smov 0   ;;  %s1641_s21 = smov 0  }
   0x6   :  { %s1643_s22 = smov 0   ;;  %s1645_s23 = smov 0  }
   0x7 LB: > { %s1119_s24 = sadd.s32 4294967295, %s1594_s23   ;;  %s1120_s25 = sadd.s32 4294967294, %s1594_s23   ;;  %s1594_s23 = sphi %s1645_s23, %s22_s23   ;;  %s1590_s22 = sphi %s1643_s22, %s1925_s22   ;;  %s1586_s21 = sphi %s1641_s21, %s1924_s21   ;;  %s1582_s20 = sphi %s1639_s20, %s1923_s20   ;;  %s1578_s19 = sphi %s1637_s19, %s1922_s19   ;;  %s1574_s18 = sphi %s1635_s18, %s1921_s18  }
   0x8   : > { %p54_p0 = scmp.ne.s32.totalorder %s1578_s19, %s1574_s18  ;;  %p1669_p1 = scmp.eq.s32.totalorder %s1119_s24, 0 }
   0x9   : > { %p1673_p2 = scmp.eq.s32.totalorder %s1119_s24, 1  ;;  %p183_p3 = scmp.eq.s32.totalorder %s1120_s25, 1 }
   0xa   : > { %s1908_s26 = scalar_select %p1669_p1, 1, 0 }
   0xb   : > { %p1679_p4 = por %p1669_p1, %p54_p0  ;;  %p1121_p5 = scmp.ge.s32.totalorder %s1594_s23, 1 }
   0xc   : > { %p1684_p6 = por %p183_p3, %p54_p0  ;;  %p190_p7 = scmp.lt.s32.totalorder %s1594_s23, 3 }
   0xd   : > { %s1910_s28 = scalar_select %p1679_p4, 1, 0 }
   0xe   : > { %s1911_s29 = scalar_select %p1684_p6, 1, 0 }
   0xf   : > { %p1689_p8 = pnand %p1121_p5, %p190_p7  ;;  %s1596_s6 = smov [#allocation5]  }
  0x10   : > { %s205_s7 = sshll.u32 %s1596_s6, 4  ;;  %s1597_s9 = smov [#allocation7]   ;;  %s1693_s7 = int_to_ptr.vmem [resolvable:$true] %s205_s7 }
  0x11   : > { %p1258_p9 = pneg %p1689_p8  ;;  %s229_s10 = sshll.u32 %s1597_s9, 4  ;;  %s1704_s10 = int_to_ptr.vmem [resolvable:$true] %s229_s10 }
  0x12   : > { %s1422_s13 = scalar_lea.hbm %s1899_s1, 4096 }
  0x13   : > { %p1700_p11 = pnand %p1258_p9, %p1669_p1  ;;  %p1423_p12 = scmp.ne.s32.totalorder %s1899_s1, %s1422_s13 }
  0x14   : > { %p1429_p5 = scmp.lt.u32.totalorder %s1422_s13, %s1899_s1 }
  0x15   : > { %p1424_p13 = pneg %p1700_p11 }
  0x17   : > { %p1425_p0 = pnand %p1424_p13, %p1423_p12 }
  0x19   : > { %p1426_p3 = pneg %p1425_p0 }
  0x1b   : > { %p1431_p7 = pnand %p1429_p5, %p1426_p3 }
  0x1d   : > { %1434 = shalt.err (!%p1431_p7)
}
  0x1e   : > { %s1435_s24 = scalar_lea.vmem %s1693_s7, 4096  ;;  %p1443_p1 = scmp.lt.s32.totalorder %s1693_s7, %s1693_s7 }
  0x1f   : > { %p1436_p9 = scmp.ne.s32.totalorder %s1693_s7, %s1435_s24  ;;  %p1444_p12 = scmp.lt.s32.totalorder %s1435_s24, %s1435_s24 }
  0x21   : > { %p1438_p10 = pnand %p1436_p9, %p1424_p13  ;;  %p1445_p0 = por %p1444_p12, %p1443_p1 }
  0x23   : > { %p1439_p6 = pneg %p1438_p10 }
  0x25   : > { %p1446_p4 = pnand %p1445_p0, %p1439_p6 }
  0x27   : > { %1449 = shalt.err (!%p1446_p4)
}
  0x28   : > { %s1598_s25 = smov 256   ;;  %s1599_s6 = smov 16  }
  0x29   : > { %1261 = dma.hbm_to_vmem [thread:$0]  (!%p1700_p11), %s1899_s1, 4096, %s1693_s7, [#allocation6], %s1598_s25, %s1598_s25, %s1599_s6  }
  0x2a   : > { %s1450_s14 = scalar_lea.hbm %s1901_s3, 4096 }
  0x2b   : > { %p1451_p1 = scmp.ne.s32.totalorder %s1901_s3, %s1450_s14  ;;  %p1457_p10 = scmp.lt.u32.totalorder %s1450_s14, %s1901_s3 }
  0x2d   : > { %p1453_p4 = pnand %p1451_p1, %p1424_p13 }
  0x2f   : > { %p1454_p6 = pneg %p1453_p4 }
  0x31   : > { %p1459_p3 = pnand %p1457_p10, %p1454_p6 }
  0x33   : > { %1462 = shalt.err (!%p1459_p3)
}
  0x34   : > { %s1463_s7 = scalar_lea.vmem %s1704_s10, 4096  ;;  %p1471_p12 = scmp.lt.s32.totalorder %s1704_s10, %s1704_s10 }
  0x35   : > { %p1464_p5 = scmp.ne.s32.totalorder %s1704_s10, %s1463_s7  ;;  %p1472_p0 = scmp.lt.s32.totalorder %s1463_s7, %s1463_s7 }
  0x37   : > { %p1466_p7 = pnand %p1464_p5, %p1424_p13  ;;  %p1473_p1 = por %p1472_p0, %p1471_p12 }
  0x39   : > { %p1467_p9 = pneg %p1466_p7 }
  0x3b   : > { %p1474_p4 = pnand %p1473_p1, %p1467_p9 }
  0x3d   : > { %1477 = shalt.err (!%p1474_p4)
}
  0x3e   : > { %s1600_s25 = smov 64   ;;  %s1601_s6 = smov 4  }
  0x3f   : > { %1264 = dma.hbm_to_vmem [thread:$0]  (!%p1700_p11), %s1901_s3, 4096, %s1704_s10, [#allocation6], %s1600_s25, %s1600_s25, %s1601_s6  }
  0x40   : > { %s34_s12 = sadd.s32 1, %s1590_s22  ;;  %s41_s13 = sadd.s32 1, %s1582_s20 }
  0x41   : > { %p36_p13 = scmp.ge.s32.totalorder %s34_s12, 2  ;;  %p48_p6 = scmp.ne.s32.totalorder %s1582_s20, %s1578_s19 }
  0x42   : > { %p49_p10 = scmp.eq.s32.totalorder %s1594_s23, 0  ;;  %p1275_p3 = scmp.lt.s32.totalorder %s1594_s23, 2 }
  0x43   : > { %s1927_s12 = smov (%p36_p13, %s34_s12), 0  ;;  %p1768_p7 = por %p1673_p2, %p48_p6 }
  0x44   : > { %p50_p5 = por %p49_p10, %p48_p6  ;;  %s38_s8 = ssub.s32 %s1590_s22, %s1927_s12 }
  0x45   : > { %s1914_s14 = scalar_select %p1768_p7, 1, 0 }
  0x46   : > { %s246_s15 = sand.u32 1, %s1582_s20   ;;  %p39_p9 = scmp.eq.s32.totalorder %s38_s8, 0 }
  0x47   : > { %s1126_s10 = sshll.u32 %s246_s15, 3  ;;  %s1127_s16 = sshll.u32 %s1590_s22, 7 }
  0x48   : > { %s1777_s17 = scalar_select %p39_p9, %s1582_s20, %s41_s13  }
  0x49   : > { %s1782_s25 = scalar_lea.hbm %s1898_s0, %s1127_s16  ;;  %s250_s27 = scalar_lea.vmem [#allocation2], %s1126_s10 }
  0x4a   : > { %s257_s6 = sshll.u32 %s250_s27, 4  ;;  %p1786_p2 = pnand %p1275_p3, %p50_p5  ;;  %s1790_s6 = int_to_ptr.vmem [resolvable:$true] %s257_s6 }
  0x4b   : > { %s247_s11 = scalar_lea.sflag [#allocation3], %s246_s15  ;;  %s1478_s13 = scalar_lea.hbm %s1782_s25, 128 }
  0x4c   : > { %p1479_p11 = scmp.ne.s32.totalorder %s1782_s25, %s1478_s13  ;;  %p1480_p12 = pneg %p1786_p2 }
  0x4d   : > { %s1483_s16 = scalar_lea.hbm %s1898_s0, 256  ;;  %p1484_p4 = scmp.lt.u32.totalorder %s1782_s25, %s1898_s0 }
  0x4e   : > { %p1481_p0 = pnand %p1480_p12, %p1479_p11  ;;  %p1485_p13 = scmp.lt.u32.totalorder %s1483_s16, %s1478_s13 }
  0x4f   : > { %p1487_p10 = scmp.lt.u32.totalorder %s1478_s13, %s1782_s25 }
  0x50   : > { %p1482_p1 = pneg %p1481_p0  ;;  %p1486_p6 = por %p1485_p13, %p1484_p4 }
  0x52   : > { %p1488_p3 = por %p1487_p10, %p1486_p6 }
  0x54   : > { %p1489_p5 = pnand %p1488_p3, %p1482_p1 }
  0x56   : > { %1492 = shalt.err (!%p1489_p5)
}
  0x57   : > { %s1493_s15 = scalar_lea.vmem %s1790_s6, 128  ;;  %s1602_s27 = smov [#allocation2]  }
  0x58   : > { %p1494_p9 = scmp.ne.s32.totalorder %s1790_s6, %s1493_s15  ;;  %s1498_s8 = sshll.u32 %s1602_s27, 4  ;;  %s1499_s8 = int_to_ptr.vmem [resolvable:$false] %s1498_s8 }
  0x59   : > { %s1500_s10 = scalar_lea.vmem %s1499_s8, 256  ;;  %p1501_p7 = scmp.lt.s32.totalorder %s1790_s6, %s1499_s8 }
  0x5a   : > { %p1496_p11 = pnand %p1494_p9, %p1480_p12  ;;  %p1502_p4 = scmp.lt.s32.totalorder %s1500_s10, %s1493_s15 }
  0x5c   : > { %p1497_p0 = pneg %p1496_p11  ;;  %p1503_p13 = por %p1502_p4, %p1501_p7 }
  0x5e   : > { %p1504_p6 = pnand %p1503_p13, %p1497_p0 }
  0x60   : > { %1507 = shalt.err (!%p1504_p6)
}
  0x61   : > { %1268 = dma.hbm_to_vmem [thread:$0]  (!%p1786_p2), %s1782_s25, 128, %s1790_s6, %s247_s11  }
  0x62   : > { %266 = sbr.rel (%p1689_p8) target bundleno = 613 (0x265), region = 40  ;;  %s1820_s13 = sand.u32 (!%p1689_p8), 1, %s1578_s19  }
  0x63   : > { %s1129_s16 = sshll.u32 (!%p1689_p8), %s1820_s13, 3  ;;  %s269_s24 = scalar_lea.sflag (!%p1689_p8), [#allocation3], %s1820_s13 }
  0x64   : > { %s1826_s7 = scalar_lea.vmem (!%p1689_p8), [#allocation2], %s1129_s16  ;;  %p1916_p7 = scmp.ne.s32.totalorder (!%p1689_p8), %s1910_s28, 0 }
  0x69   : > { %1561 = dma.done.wait (%p1916_p7), %s269_s24, 128  }
  0x6a   : > { %1563 = vsyncadd (%p1916_p7), %s269_s24, 4294967168  ;;  %p1917_p2 = scmp.ne.s32.totalorder %s1908_s26, 0 }
  0x6c   : > { %1565 = dma.done.wait (%p1917_p2), [#allocation6], 8192  }
  0x6d   : > { %1567 = vsyncadd (%p1917_p2), [#allocation6], 4294959104  ;;  %v1603_v0 = vmov 0   ;;  %v1334_v1 = vld [vmem:[#allocation5 + $0x4] ss:$16 sps:$4 sm:$0xff]   ;;  %v1386_v39 = vld [vmem:[#allocation7 + $0x48] sm:$0xff]  }
  0x6e   : > { %579 = vmatprep.mubr.bf16.mxu0 %v1603_v0  ;;  %620 = vmatprep.mubr.bf16.mxu1 %v1603_v0  ;;  %v1336_v2 = vld [vmem:[#allocation5 + $0xc] ss:$16 sps:$4 sm:$0xff]   ;;  %v1338_v3 = vld [vmem:[#allocation5] ss:$16 sps:$4 sm:$0xff]   ;;  %v1339_v4 = vld [vmem:[#allocation5 + $0x8] ss:$16 sps:$4 sm:$0xff]  }
  0x6f   : > { %547 = vmatprep.subr.bf16.mxu0 %v1334_v1  ;;  %588 = vmatprep.subr.bf16.mxu1 %v1336_v2  ;;  %v1340_v5 = vld [vmem:[#allocation5 + $0x24] ss:$16 sps:$4 sm:$0xff]   ;;  %v1342_v6 = vld [vmem:[#allocation5 + $0x2c] ss:$16 sps:$4 sm:$0xff]   ;;  %v1344_v7 = vld [vmem:[#allocation5 + $0x20] ss:$16 sps:$4 sm:$0xff]  }
  0x70   : > { %548 = vmatpush1.bf16.msra.mxu0 %v1338_v3  ;;  %589 = vmatpush1.bf16.msra.mxu1 %v1339_v4  ;;  %v1345_v8 = vld [vmem:[#allocation5 + $0x28] ss:$16 sps:$4 sm:$0xff]   ;;  %v1346_v9 = vld [vmem:[#allocation5 + $0x44] ss:$16 sps:$4 sm:$0xff]   ;;  %v1348_v10 = vld [vmem:[#allocation5 + $0x4c] ss:$16 sps:$4 sm:$0xff]   ;;  %v367_v3 = vlaneseq }
  0x71   : > { %549 = vmatprep.subr.bf16.mxu0 %v1340_v5  ;;  %590 = vmatprep.subr.bf16.mxu1 %v1342_v6  ;;  %v1350_v11 = vld [vmem:[#allocation5 + $0x40] ss:$16 sps:$4 sm:$0xff]   ;;  %v1351_v12 = vld [vmem:[#allocation5 + $0x48] ss:$16 sps:$4 sm:$0xff]   ;;  %v1352_v13 = vld [vmem:[#allocation5 + $0x64] ss:$16 sps:$4 sm:$0xff]  }
  0x72   : > { %v1354_v14 = vld [vmem:[#allocation5 + $0x6c] ss:$16 sps:$4 sm:$0xff]   ;;  %v1356_v15 = vld [vmem:[#allocation5 + $0x60] ss:$16 sps:$4 sm:$0xff]   ;;  %v1357_v16 = vld [vmem:[#allocation5 + $0x68] ss:$16 sps:$4 sm:$0xff]  }
  0x73   : > { %v1358_v17 = vld [vmem:[#allocation5 + $0x84] ss:$16 sps:$4 sm:$0xff]   ;;  %v1360_v18 = vld [vmem:[#allocation5 + $0x8c] ss:$16 sps:$4 sm:$0xff]   ;;  %v1362_v19 = vld [vmem:[#allocation5 + $0x80] ss:$16 sps:$4 sm:$0xff]  }
  0x74   : > { %550 = vmatpush1.bf16.msra.mxu0 %v1344_v7  ;;  %591 = vmatpush1.bf16.msra.mxu1 %v1345_v8  ;;  %v1363_v20 = vld [vmem:[#allocation5 + $0x88] ss:$16 sps:$4 sm:$0xff]   ;;  %v1364_v21 = vld [vmem:[#allocation5 + $0xa4] ss:$16 sps:$4 sm:$0xff]   ;;  %v1366_v22 = vld [vmem:[#allocation5 + $0xac] ss:$16 sps:$4 sm:$0xff]  }
  0x75   : > { %551 = vmatprep.subr.bf16.mxu0 %v1346_v9  ;;  %592 = vmatprep.subr.bf16.mxu1 %v1348_v10  ;;  %v1368_v23 = vld [vmem:[#allocation5 + $0xa0] ss:$16 sps:$4 sm:$0xff]   ;;  %v1369_v24 = vld [vmem:[#allocation5 + $0xa8] ss:$16 sps:$4 sm:$0xff]   ;;  %v1370_v25 = vld [vmem:[#allocation5 + $0xc4] ss:$16 sps:$4 sm:$0xff]  }
  0x76   : > { %v1372_v26 = vld [vmem:[#allocation5 + $0xcc] ss:$16 sps:$4 sm:$0xff]   ;;  %v1374_v27 = vld [vmem:[#allocation5 + $0xc0] ss:$16 sps:$4 sm:$0xff]   ;;  %v1375_v28 = vld [vmem:[#allocation5 + $0xc8] ss:$16 sps:$4 sm:$0xff]  }
  0x77   : > { %v1376_v29 = vld [vmem:[#allocation5 + $0xe4] ss:$16 sps:$4 sm:$0xff]   ;;  %v1378_v30 = vld [vmem:[#allocation5 + $0xec] ss:$16 sps:$4 sm:$0xff]   ;;  %v1380_v31 = vld [vmem:[#allocation5 + $0xe0] ss:$16 sps:$4 sm:$0xff]  }
  0x78   : > { %552 = vmatpush1.bf16.msra.mxu0 %v1350_v11  ;;  %593 = vmatpush1.bf16.msra.mxu1 %v1351_v12  ;;  %v1381_v32 = vld [vmem:[#allocation5 + $0xe8] ss:$16 sps:$4 sm:$0xff]   ;;  %v1382_v34 = vld [vmem:[#allocation7 + $0x40] sm:$0xff]   ;;  %v1390_v43 = vld [vmem:[#allocation7 + $0x50] sm:$0xff]   ;;  %v368_v4 = vshrl.u32 %v367_v3, 7  ;;  %s1199_s6 = sshll.u32 %s1586_s21, 7 }
  0x79   : > { %553 = vmatprep.subr.bf16.mxu0 %v1352_v13  ;;  %594 = vmatprep.subr.bf16.mxu1 %v1354_v14  ;;  %v331_v33 = vld [vmem:[%s1826_s7] sm:$0xff]  ;;  %v1383_v35 = vld [vmem:[#allocation7 + $0xc0] sm:$0xff]   ;;  %v1387_v40 = vld [vmem:[#allocation7 + $0xc8] sm:$0xff]   ;;  %s310_s9 = scalar_lea.vmem [#allocation8], %s1129_s16  ;;  %s1849_s8 = scalar_lea.hbm %s1903_s5, %s1199_s6 }
  0x7a   : > { %v1384_v36 = vld [vmem:[#allocation7] sm:$0xff]   ;;  %v332_v38 = vpack.c.bf16 %v331_v33, %v331_v33  ;;  %v1388_v41 = vld [vmem:[#allocation7 + $0x8] sm:$0xff]   ;;  %v1391_v44 = vld [vmem:[#allocation7 + $0xd0] sm:$0xff]   ;;  %v369_v5 = vsub.s32 0, %v368_v4  ;;  %v377_v6 = vsub.s32 2, %v368_v4  ;;  %v373_v8 = vsub.s32 1, %v368_v4 }
  0x7b   : > { %v1385_v37 = vld [vmem:[#allocation7 + $0x80] sm:$0xff]   ;;  %v1389_v42 = vld [vmem:[#allocation7 + $0x88] sm:$0xff]   ;;  %v1392_v45 = vld [vmem:[#allocation7 + $0x10] sm:$0xff]   ;;  %v381_v9 = vsub.s32 3, %v368_v4  ;;  %s1006_s11 = sshll.u32 %s310_s9, 4  ;;  %s993_s10 = scalar_lea.sflag [#allocation4], %s1820_s13  ;;  %s1851_s11 = int_to_ptr.vmem [resolvable:$true] %s1006_s11 }
  0x7c   : > { %554 = vmatpush1.bf16.msra.mxu0 %v1356_v15  ;;  %595 = vmatpush1.bf16.msra.mxu1 %v1357_v16  ;;  %v1393_v46 = vld [vmem:[#allocation7 + $0x90] sm:$0xff]   ;;  %v1394_v47 = vld [vmem:[#allocation7 + $0x58] sm:$0xff]   ;;  %v1398_v51 = vld [vmem:[#allocation7 + $0x60] sm:$0xff]   ;;  %s1508_s24 = scalar_lea.vmem %s1851_s11, 128  ;;  %p1918_p12 = scmp.ne.s32.totalorder %s1914_s14, 0 }
  0x7d   : > { %555 = vmatprep.subr.bf16.mxu0 %v1358_v17  ;;  %596 = vmatprep.subr.bf16.mxu1 %v1360_v18  ;;  %v1395_v48 = vld [vmem:[#allocation7 + $0xd8] sm:$0xff]   ;;  %v1399_v52 = vld [vmem:[#allocation7 + $0xe0] sm:$0xff]   ;;  %v1402_v55 = vld [vmem:[#allocation7 + $0x68] sm:$0xff]   ;;  %p1509_p8 = scmp.ne.s32.totalorder %s1851_s11, %s1508_s24  ;;  %s1604_s21 = smov [#allocation8]  }
  0x7e   : > { %v1396_v49 = vld [vmem:[#allocation7 + $0x18] sm:$0xff]   ;;  %v1400_v53 = vld [vmem:[#allocation7 + $0x20] sm:$0xff]   ;;  %v1403_v56 = vld [vmem:[#allocation7 + $0xe8] sm:$0xff]   ;;  %s1512_s16 = sshll.u32 %s1604_s21, 4  ;;  %s1513_s16 = int_to_ptr.vmem [resolvable:$false] %s1512_s16 }
  0x7f   : > { %v1397_v50 = vld [vmem:[#allocation7 + $0x98] sm:$0xff]   ;;  %v1401_v54 = vld [vmem:[#allocation7 + $0xa0] sm:$0xff]   ;;  %v1404_v57 = vld [vmem:[#allocation7 + $0x28] sm:$0xff]   ;;  %p1510_p1 = pnand %p1509_p8, %p1918_p12  ;;  %s1514_s7 = scalar_lea.vmem %s1513_s16, 256 }
  0x80   : > { %556 = vmatpush1.bf16.msra.mxu0 %v1362_v19  ;;  %597 = vmatpush1.bf16.msra.mxu1 %v1363_v20  ;;  %v1405_v58 = vld [vmem:[#allocation7 + $0xa8] sm:$0xff]   ;;  %v1406_v59 = vld [vmem:[#allocation7 + $0x70] sm:$0xff]   ;;  %v1410_v63 = vld [vmem:[#allocation7 + $0x78] sm:$0xff]   ;;  %p1515_p3 = scmp.lt.s32.totalorder %s1851_s11, %s1513_s16  ;;  %p1516_p5 = scmp.lt.s32.totalorder %s1514_s7, %s1508_s24 }
  0x81   : > { %557 = vmatprep.subr.bf16.mxu0 %v1364_v21  ;;  %598 = vmatprep.subr.bf16.mxu1 %v1366_v22  ;;  %v1407_v60 = vld [vmem:[#allocation7 + $0xf0] sm:$0xff]   ;;  %v1411_v0 = vld [vmem:[#allocation7 + $0xf8] sm:$0xff]   ;;  %p1511_p10 = pneg %p1510_p1 }
  0x82   : > { %v1408_v61 = vld [vmem:[#allocation7 + $0x30] sm:$0xff]   ;;  %v1412_v1 = vld [vmem:[#allocation7 + $0x38] sm:$0xff]   ;;  %p1517_p9 = por %p1516_p5, %p1515_p3 }
  0x83   : > { %v1409_v62 = vld [vmem:[#allocation7 + $0xb0] sm:$0xff]   ;;  %v1413_v2 = vld [vmem:[#allocation7 + $0xb8] sm:$0xff]  }
  0x84   : > { %558 = vmatpush1.bf16.msra.mxu0 %v1368_v23  ;;  %599 = vmatpush1.bf16.msra.mxu1 %v1369_v24  ;;  %v365_v7 = vld [vmem:[%s1900_s2] sm:$0xf]  ;;  %p1518_p11 = pnand %p1517_p9, %p1511_p10 }
  0x85   : > { %559 = vmatprep.subr.bf16.mxu0 %v1370_v25  ;;  %600 = vmatprep.subr.bf16.mxu1 %v1372_v26  ;;  %v370_v10 = vrot.slane %v365_v7, %v369_v5  ;;  %v378_v11 = vrot.slane %v365_v7, %v377_v6  ;;  %v374_v12 = vrot.slane %v365_v7, %v373_v8 }
  0x86   : > { %v382_v13 = vrot.slane %v365_v7, %v381_v9 }
  0x88   : > { %560 = vmatpush1.bf16.msra.mxu0 %v1374_v27  ;;  %601 = vmatpush1.bf16.msra.mxu1 %v1375_v28 }
  0x89   : > { %561 = vmatprep.subr.bf16.mxu0 %v1376_v29  ;;  %602 = vmatprep.subr.bf16.mxu1 %v1378_v30 }
  0x8c   : > { %562 = vmatpush1.bf16.msra.mxu0 %v1380_v31  ;;  %603 = vmatpush1.bf16.msra.mxu1 %v1381_v32 }
  0x8d   : > { %1202 = vmatprep.subr.bf16.mxu0 %v1382_v34  ;;  %1224 = vmatprep.subr.bf16.mxu1 %v1383_v35 }
  0x8f   : > { %580 = vmatmul.mubr.bf16.vlgmr.msra.gmra.mrb[0].mxu0 %v332_v38  ;;  %621 = vmatmul.mubr.bf16.vlgmr.msra.gmra.mrb[0].mxu1 %v332_v38 }
  0x90   : > { %1203 = vmatpush3.bf16.msra.mxu0 %v1384_v36  ;;  %1225 = vmatpush3.bf16.msra.mxu1 %v1385_v37 }
  0x91   : > { %1204 = vmatprep.subr.bf16.mxu0 %v1386_v39  ;;  %1226 = vmatprep.subr.bf16.mxu1 %v1387_v40 }
  0x94   : > { %1205 = vmatpush3.bf16.msra.mxu0 %v1388_v41  ;;  %1227 = vmatpush3.bf16.msra.mxu1 %v1389_v42 }
  0x95   : > { %1206 = vmatprep.subr.bf16.mxu0 %v1390_v43  ;;  %1228 = vmatprep.subr.bf16.mxu1 %v1391_v44 }
  0x98   : > { %1207 = vmatpush3.bf16.msra.mxu0 %v1392_v45  ;;  %1229 = vmatpush3.bf16.msra.mxu1 %v1393_v46 }
  0x99   : > { %1208 = vmatprep.subr.bf16.mxu0 %v1394_v47  ;;  %1230 = vmatprep.subr.bf16.mxu1 %v1395_v48 }
  0x9c   : > { %1209 = vmatpush3.bf16.msra.mxu0 %v1396_v49  ;;  %1231 = vmatpush3.bf16.msra.mxu1 %v1397_v50 }
  0x9d   : > { %1210 = vmatprep.subr.bf16.mxu0 %v1398_v51  ;;  %1232 = vmatprep.subr.bf16.mxu1 %v1399_v52 }
  0xa0   : > { %1211 = vmatpush3.bf16.msra.mxu0 %v1400_v53  ;;  %1233 = vmatpush3.bf16.msra.mxu1 %v1401_v54 }
  0xa1   : > { %1212 = vmatprep.subr.bf16.mxu0 %v1402_v55  ;;  %1234 = vmatprep.subr.bf16.mxu1 %v1403_v56 }
  0xa4   : > { %1213 = vmatpush3.bf16.msra.mxu0 %v1404_v57  ;;  %1235 = vmatpush3.bf16.msra.mxu1 %v1405_v58 }
  0xa5   : > { %1214 = vmatprep.subr.bf16.mxu0 %v1406_v59  ;;  %1236 = vmatprep.subr.bf16.mxu1 %v1407_v60  ;;  %v1133_v59 = vld [vmem:[%s1902_s4] ss:$0 sm:$0xff] }
  0xa8   : > { %1215 = vmatpush3.bf16.msra.mxu0 %v1408_v61  ;;  %1237 = vmatpush3.bf16.msra.mxu1 %v1409_v62 }
  0xa9   : > { %1216 = vmatprep.subr.bf16.mxu0 %v1410_v63  ;;  %1238 = vmatprep.subr.bf16.mxu1 %v1411_v0 }
  0xac   : > { %1217 = vmatpush3.bf16.msra.mxu0 %v1412_v1  ;;  %1239 = vmatpush3.bf16.msra.mxu1 %v1413_v2 }
 0x162   : > { %v581_v14 = vpop.f32.mrb[0].mxu0  ;;  %v622_v15 = vpop.f32.mrb[0].mxu1 }
 0x163   : > { %v582_v16 = vadd.f32 %v581_v14, %v370_v10  ;;  %v623_v17 = vadd.f32 %v622_v15, %v378_v11  ;;  %v583_v18 = vpop.f32.mrb[1].mxu0  ;;  %v624_v19 = vpop.f32.mrb[1].mxu1 }
 0x164   : > { %v584_v20 = vadd.f32 %v583_v18, %v374_v12  ;;  %v625_v21 = vadd.f32 %v624_v19, %v382_v13  ;;  %v585_v22 = vpop.f32.mrb[2].mxu0  ;;  %v626_v23 = vpop.f32.mrb[2].mxu1 }
 0x165   : > { %v633_v24 = vmul.f32 0.70710677, %v582_v16  ;;  %v635_v25 = vmul.f32 0.70710677, %v623_v17  ;;  %v586_v28 = vpop.f32.mrb[3].mxu0  ;;  %v627_v29 = vpop.f32.mrb[3].mxu1 }
 0x166   : > { %v634_v26 = vmul.f32 0.70710677, %v584_v20  ;;  %v636_v27 = vmul.f32 0.70710677, %v625_v21  ;;  %v629_v34 = vmul.f32 0.5, %v582_v16  ;;  %v631_v37 = vmul.f32 0.5, %v623_v17 }
 0x167   : > { %1414 = verf.f32 %v633_v24  ;;  %v630_v38 = vmul.f32 0.5, %v584_v20  ;;  %v632_v41 = vmul.f32 0.5, %v625_v21 }
 0x168   : > { %1416 = verf.f32 %v635_v25 }
 0x169   : > { %1418 = verf.f32 %v634_v26 }
 0x16a   : > { %1420 = verf.f32 %v636_v27 }
 0x171   : > { %v1415_v30 = vpop.eup %1414 }
 0x172   : > { %v1417_v31 = vpop.eup %1416  ;;  %v641_v32 = vadd.f32 1.0, %v1415_v30 }
 0x173   : > { %v1419_v33 = vpop.eup %1418  ;;  %v643_v35 = vadd.f32 1.0, %v1417_v31 }
 0x174   : > { %v1421_v36 = vpop.eup %1420  ;;  %v642_v39 = vadd.f32 1.0, %v1419_v33  ;;  %v645_v40 = vmul.f32 %v641_v32, %v629_v34 }
 0x175   : > { %v644_v42 = vadd.f32 1.0, %v1421_v36  ;;  %v647_v43 = vmul.f32 %v643_v35, %v631_v37 }
 0x176   : > { %v646_v44 = vmul.f32 %v642_v39, %v630_v38  ;;  %v650_v47 = vpack.c.bf16 %v645_v40, %v645_v40 }
 0x177   : > { %v648_v45 = vmul.f32 %v644_v42, %v632_v41  ;;  %v652_v49 = vpack.c.bf16 %v647_v43, %v647_v43 }
 0x178   : > { %v651_v46 = vpack.c.bf16 %v646_v44, %v646_v44 }
 0x179   : > { %v653_v48 = vpack.c.bf16 %v648_v45, %v648_v45 }
 0x17a   : > { %942 = vmatprep.mubr.bf16.mxu0 %v651_v46 }
 0x17b   : > { %982 = vmatprep.mubr.bf16.mxu1 %v653_v48  ;;  %943 = vmatmul.mubr.bf16.vlgmr.msra.gmra.mrb[4].mxu0 %v650_v47 }
 0x17c   : > { %983 = vmatmul.mubr.bf16.vlgmr.msra.gmra.mrb[4].mxu1 %v652_v49 }
 0x24e   : > { %v1218_v50 = vpop.f32.mrb[4].mxu0 }
 0x24f   : > { %v1240_v51 = vpop.f32.mrb[4].mxu1  ;;  %v1219_v52 = vpop.f32.mrb[5].mxu0 }
 0x250   : > { %v1220_v53 = vadd.f32 %v1219_v52, %v1218_v50  ;;  %v1241_v54 = vpop.f32.mrb[5].mxu1  ;;  %v1221_v55 = vpop.f32.mrb[6].mxu0 }
 0x251   : > { %v1242_v56 = vadd.f32 %v1241_v54, %v1240_v51  ;;  %v1243_v57 = vpop.f32.mrb[6].mxu1  ;;  %v1222_v58 = vpop.f32.mrb[7].mxu0 }
 0x252   : > { %v1244_v60 = vpop.f32.mrb[7].mxu1 }
 0x253   : > { %v985_v61 = vadd.f32 %v1242_v56, %v1220_v53 }
 0x255   : > { %v990_v62 = vadd.f32 %v1133_v59, %v985_v61 }
 0x257   : > { %991 = vst [vmem:[%s310_s9] sm:$0xff] %v990_v62 }
 0x258   : > { %1521 = shalt.err (!%p1518_p11)
}
 0x259   : > { %s1522_s13 = scalar_lea.hbm %s1849_s8, 128  ;;  %s1526_s30 = scalar_lea.hbm %s1903_s5, 256 }
 0x25a   : > { %p1523_p0 = scmp.ne.s32.totalorder %s1849_s8, %s1522_s13  ;;  %p1527_p6 = scmp.lt.u32.totalorder %s1849_s8, %s1903_s5 }
 0x25b   : > { %p1528_p7 = scmp.lt.u32.totalorder %s1526_s30, %s1522_s13  ;;  %p1530_p8 = scmp.lt.u32.totalorder %s1522_s13, %s1849_s8 }
 0x25c   : > { %p1524_p4 = pnand %p1523_p0, %p1918_p12 }
 0x25d   : > { %p1529_p2 = por %p1528_p7, %p1527_p6 }
 0x25e   : > { %p1525_p13 = pneg %p1524_p4 }
 0x25f   : > { %p1531_p1 = por %p1530_p8, %p1529_p2 }
 0x261   : > { %p1532_p10 = pnand %p1531_p1, %p1525_p13 }
 0x263   : > { %1535 = shalt.err (!%p1532_p10)
}
 0x264   : > { %1256 = dma.vmem_to_hbm [thread:$0]  (%p1918_p12), %s1851_s11, 128, %s1849_s8, %s993_s10  }
 0x265 PF: > { %s1018_s9 = sand.u32 1, %s1574_s18   ;;  %p1919_p3 = scmp.ne.s32.totalorder %s1911_s29, 0 }
 0x266   : > { %p1920_p5 = scmp.ge.s32.totalorder %s1594_s23, 2  ;;  %s1019_s15 = scalar_lea.sflag [#allocation4], %s1018_s9 }
 0x268   : > { %p1270_p9 = pnand %p1920_p5, %p1919_p3 }
 0x26a   : > { %1569 = dma.done.wait (!%p1270_p9), %s1019_s15, 128  }
 0x26b   : > { %1571 = vsyncadd (!%p1270_p9), %s1019_s15, 4294967168  ;;  %s22_s23 = sadd.s32 1, %s1594_s23   ;;  %s1921_s18 = smov %s1578_s19 }
 0x26c   : > { %p19_p11 = scmp.ge.s32.totalorder %s22_s23, 4   ;;  %s1922_s19 = smov %s1582_s20 }
 0x26d   : > { %s1923_s20 = smov %s1777_s17  ;;  %s1924_s21 = smov %s1590_s22 }
 0x26e   : > { %s1925_s22 = smov %s1927_s12  ;;  %21 = sbr.rel (!%p19_p11) target bundleno = 7 (0x7), region = 102 }
 0x275   :  { %1024 = vsyncpa [#allocation3], 1 }
 0x276   :  { %1026 = vsyncpa [#allocation3 + $0x1], 1 }
 0x277   :  { %1027 = vsyncpa [#allocation6], 1 }
 0x278   :  { %1028 = vsyncpa [#allocation4], 1 }
 0x279   :  { %1030 = vsyncpa [#allocation4 + $0x1], 1 }

</bundles_post_ra>
